<compile_context>
chip_gen: v7x
topology: tpu7x:2x2x1
jax: 0.10.0
libtpu: 0.0.40
codegen_flags: <defaults>
</compile_context>

<pallas_src>
import itertools

import numpy as np
import jax
import jax.numpy as jnp
from jax.experimental import pallas as pl
from jax.experimental.pallas import tpu as pltpu


_PACK = 2  # 8x8 pixel blocks packed per kernel row -> 128-lane-dense last dim.
_LANES = 64 * _PACK  # 128


def _make_dct_params():
    """Deterministic parameters, exactly as in dct_8x8.__init__ (numpy)."""
    tensor = np.zeros((8, 8, 8, 8), dtype=np.float32)
    for x, y, u, v in itertools.product(range(8), repeat=4):
        tensor[x, y, u, v] = np.cos((2 * x + 1) * u * np.pi / 16) * np.cos(
            (2 * y + 1) * v * np.pi / 16
        )
    alpha = np.array([1.0 / np.sqrt(2)] + [1] * 7)
    scale = (np.outer(alpha, alpha) * 0.25).astype(np.float32)
    return tensor, scale


def _make_packed_matrix(tensor, scale):
    """128x128 block-diagonal DCT matrix with `scale` folded into the columns.

    out[b, uv] = sum_xy (img[b, xy] - 128) * T[xy, uv] * scale[uv]
    """
    t2d = tensor.reshape(64, 64) * scale.reshape(1, 64)  # (x*8+y, u*8+v), scaled
    t_big = np.zeros((_LANES, _LANES), dtype=np.float32)
    for p in range(_PACK):
        t_big[p * 64:(p + 1) * 64, p * 64:(p + 1) * 64] = t2d
    return jnp.asarray(t_big)


def _dct_kernel(x_ref, t_ref, o_ref):
    # x_ref: (tile_b, 128)  t_ref: (128, 128)  o_ref: (tile_b, 128)
    x = x_ref[...] - 128.0  # VPU subtract; free in an HBM-bound kernel.
    o_ref[...] = jnp.dot(x, t_ref[...], preferred_element_type=jnp.float32)


def _round_up(n, m):
    return ((n + m - 1) // m) * m


def dct_8x8_pallas(image, t_big, *, tile_b=1024):
    """image: (B, 8, 8) float32 -> (B, 8, 8) float32 DCT coefficients."""
    B = image.shape[0]
    assert image.shape[1:] == (8, 8)

    # Pack 2 pixel blocks per row; pad batch so the packed rows tile evenly.
    rows = pl.cdiv(B, _PACK)
    tile_b = max(8, min(tile_b, _round_up(rows, 8)))  # shrink for small batches
    rows_pad = _round_up(rows, tile_b)
    b_pad = rows_pad * _PACK

    x2d = image.reshape(B, 64).astype(jnp.float32)
    if b_pad != B:
        x2d = jnp.pad(x2d, ((0, b_pad - B), (0, 0)))
    x_packed = x2d.reshape(rows_pad, _LANES)

    grid = (rows_pad // tile_b,)

    # VMEM: double-buffered x/out blocks + resident 64 KiB constant. Only raise
    # the scoped limit when huge tiles would exceed conservative defaults.
    block_bytes = tile_b * _LANES * 4
    vmem_needed = 2 * 2 * block_bytes + _LANES * _LANES * 4
    vmem_limit = vmem_needed + (4 << 20) if vmem_needed > (12 << 20) else None

    out_packed = pl.pallas_call(
        _dct_kernel,
        out_shape=jax.ShapeDtypeStruct((rows_pad, _LANES), jnp.float32),
        grid=grid,
        in_specs=[
            pl.BlockSpec((tile_b, _LANES), lambda i: (i, 0)),
            pl.BlockSpec((_LANES, _LANES), lambda i: (0, 0)),  # stays resident
        ],
        out_specs=pl.BlockSpec((tile_b, _LANES), lambda i: (i, 0)),
        compiler_params=pltpu.CompilerParams(
            dimension_semantics=("parallel",),
            vmem_limit_bytes=vmem_limit,
        ),
    )(x_packed, t_big)

    out2d = out_packed.reshape(b_pad, 64)[:B]
    return out2d.reshape(B, 8, 8)


def dct_8x8_ref(image, tensor, scale):
    """Pure-JAX reference matching the PyTorch forward."""
    image = image - 128.0
    return scale * jnp.tensordot(image, tensor, axes=2)


if __name__ == "__main__":
    tensor_np, scale_np = _make_dct_params()
    t_big = _make_packed_matrix(tensor_np, scale_np)
    tensor = jnp.asarray(tensor_np)
    scale = jnp.asarray(scale_np)

    B = 50  # odd-ish batch of 8x8 blocks to exercise the packing/padding path
    key = jax.random.PRNGKey(0)
    image = jax.random.uniform(
        key, (B, 8, 8), dtype=jnp.float32, minval=0.0, maxval=255.0
    )

    out = dct_8x8_pallas(image, t_big)
    out = jax.block_until_ready(out)

    ref = dct_8x8_ref(image, tensor, scale)
    np.testing.assert_allclose(np.asarray(out), np.asarray(ref), rtol=1e-4, atol=1e-3)

    print("KERNEL_OK")
</pallas_src>

<mosaic_0001>
module attributes {stable_mosaic.version = 11 : i64} {
  func.func @_dct_kernel(%arg0: i32, %arg1: memref<32x128xf32, #tpu.memory_space<vmem>>, %arg2: memref<128x128xf32, #tpu.memory_space<vmem>>, %arg3: memref<32x128xf32, #tpu.memory_space<vmem>>) attributes {dimension_semantics = [#tpu.dimension_semantics<parallel>], iteration_bounds = array<i64: 1>, scalar_prefetch = 0 : i64, scratch_operands = 0 : i64, tpu.core_type = #tpu.core_type<tc>, window_params = [{transform_indices = @transform_0, window_bounds = array<i64: 32, 128>}, {pipeline_mode = #tpu.pipeline_mode<synchronous>, transform_indices = @transform_1, window_bounds = array<i64: 128, 128>}, {transform_indices = @transform_2, window_bounds = array<i64: 32, 128>}]} {
    %c0 = arith.constant 0 : index
    %c0_0 = arith.constant 0 : index
    %0 = vector.load %arg1[%c0, %c0_0] : memref<32x128xf32, #tpu.memory_space<vmem>>, vector<32x128xf32>
    %cst = arith.constant 1.280000e+02 : f32
    %1 = vector.broadcast %cst : f32 to vector<32x128xf32>
    %2 = arith.subf %0, %1 : vector<32x128xf32>
    %c0_1 = arith.constant 0 : index
    %c0_2 = arith.constant 0 : index
    %3 = vector.load %arg2[%c0_1, %c0_2] : memref<128x128xf32, #tpu.memory_space<vmem>>, vector<128x128xf32>
    %cst_3 = arith.constant dense<0.000000e+00> : vector<32x128xf32>
    %4 = tpu.matmul %2, %3, %cst_3 {dimension_numbers = #tpu.dot_dimension_numbers<[1], [0], [0], [1], [0, 0, 1, 1], [], []>} : vector<32x128xf32>, vector<128x128xf32>, vector<32x128xf32> -> vector<32x128xf32>
    %c0_4 = arith.constant 0 : index
    %c0_5 = arith.constant 0 : index
    %5 = vector.load %arg3[%c0_4, %c0_5] : memref<32x128xf32, #tpu.memory_space<vmem>>, vector<32x128xf32>
    tpu.vector_store %arg3[%c0_4, %c0_5], %4 {strides = array<i32>} : memref<32x128xf32, #tpu.memory_space<vmem>>, vector<32x128xf32>,
    return
  }
  func.func @transform_0(%arg0: i32) -> (i32, i32) {
    %c0_i32 = arith.constant 0 : i32
    %c0_i32_0 = arith.constant 0 : i32
    return %arg0, %c0_i32 : i32, i32
  }
  func.func @transform_1(%arg0: i32) -> (i32, i32) {
    %c0_i32 = arith.constant 0 : i32
    %c0_i32_0 = arith.constant 0 : i32
    %c0_i32_1 = arith.constant 0 : i32
    return %c0_i32, %c0_i32_0 : i32, i32
  }
  func.func @transform_2(%arg0: i32) -> (i32, i32) {
    %c0_i32 = arith.constant 0 : i32
    %c0_i32_0 = arith.constant 0 : i32
    return %arg0, %c0_i32 : i32, i32
  }
}

</mosaic_0001>

<bundles_post_ra>
// kernel: tpu_custom_call.1
= control target key start
LH: loop header
LB: loop body
LE: loop exit
PB: predicated region body
PF: predicated region fallthrough
CT: control target
= control target key end

     0   :  { %7 = vsyncpa [#allocation3], 0  ;;  %s423_s0 = inlined_call_operand.hbm [shape: f32[32,128], index: 0, kind: input, shape index: {}]   ;;  %s424_s1 = inlined_call_operand.hbm [shape: f32[128,128], index: 1, kind: input, shape index: {}]   ;;  %s425_s2 = inlined_call_operand.hbm [shape: f32[32,128], index: 2, kind: output, shape index: {}]  }
   0x1   :  { %8 = vsyncpa [#allocation6], 0 }
   0x2   :  { %9 = vsyncpa [#allocation4], 0  ;;  %s358_s9 = smov [#allocation2]   ;;  %s286_s13 = scalar_lea.hbm %s423_s0, 512 }
   0x3   :  { %s15_s10 = sshll.u32 %s358_s9, 4  ;;  %p287_p0 = scmp.ne.s32.totalorder %s423_s0, %s286_s13  ;;  %s16_s10 = int_to_ptr.vmem [resolvable:$true] %s15_s10 }
   0x4   :  { %p290_p1 = scmp.lt.u32.totalorder %s286_s13, %s423_s0 }
   0x6   :  { %p292_p2 = pnand %p290_p1, %p287_p0 }
   0x8   :  { %295 = shalt.err (!%p292_p2)
}
   0x9   :  { %s296_s18 = scalar_lea.vmem %s16_s10, 512  ;;  %p301_p4 = scmp.lt.s32.totalorder %s16_s10, %s16_s10 }
   0xa   :  { %p297_p3 = scmp.ne.s32.totalorder %s16_s10, %s296_s18  ;;  %p302_p5 = scmp.lt.s32.totalorder %s296_s18, %s296_s18 }
   0xc   :  { %p303_p6 = por %p302_p5, %p301_p4 }
   0xe   :  { %p304_p7 = pnand %p303_p6, %p297_p3 }
  0x10   :  { %307 = shalt.err (!%p304_p7)
}
  0x11   :  { %s359_s19 = smov 128   ;;  %s360_s20 = smov 8  }
  0x12   :  { %21 = dma.hbm_to_vmem [thread:$0]  %s423_s0, 512, %s16_s10, [#allocation3], %s359_s19, %s359_s19, %s360_s20  }
  0x13   :  { %s361_s23 = smov [#allocation5]   ;;  %s308_s27 = scalar_lea.hbm %s424_s1, 2048 }
  0x14   :  { %s27_s24 = sshll.u32 %s361_s23, 4  ;;  %p309_p8 = scmp.ne.s32.totalorder %s424_s1, %s308_s27  ;;  %s28_s24 = int_to_ptr.vmem [resolvable:$true] %s27_s24 }
  0x15   :  { %p312_p9 = scmp.lt.u32.totalorder %s308_s27, %s424_s1 }
  0x17   :  { %p314_p10 = pnand %p312_p9, %p309_p8 }
  0x19   :  { %317 = shalt.err (!%p314_p10)
}
  0x1a   :  { %s318_s4 = scalar_lea.vmem %s28_s24, 2048  ;;  %p323_p12 = scmp.lt.s32.totalorder %s28_s24, %s28_s24 }
  0x1b   :  { %p319_p11 = scmp.ne.s32.totalorder %s28_s24, %s318_s4  ;;  %p324_p13 = scmp.lt.s32.totalorder %s318_s4, %s318_s4 }
  0x1d   :  { %p325_p0 = por %p324_p13, %p323_p12 }
  0x1f   :  { %p326_p1 = pnand %p325_p0, %p319_p11 }
  0x21   :  { %329 = shalt.err (!%p326_p1)
}
  0x22   :  { %33 = dma.hbm_to_vmem [thread:$0]  %s424_s1, 2048, %s28_s24, [#allocation6], %s359_s19, %s359_s19, %s360_s20  }
  0x23   :  { %352 = dma.done.wait [#allocation3], 512  }
  0x24   :  { %353 = vsyncadd [#allocation3], 4294966784 }
  0x25   :  { %354 = dma.done.wait [#allocation6], 2048  }
  0x26   :  { %355 = vsyncadd [#allocation6], 4294965248  ;;  %v48_v0 = vld [vmem:[#allocation5] sm:$0xff]  ;;  %v49_v1 = vld [vmem:[#allocation5 + $0x8] sm:$0xff]  ;;  %s362_s1 = smov [#allocation7]  }
  0x27   :  { %v50_v2 = vld [vmem:[#allocation5 + $0x10] sm:$0xff]  ;;  %v233_v3 = vpack.c.bf16 %v49_v1, %v48_v0  ;;  %v51_v4 = vld [vmem:[#allocation5 + $0x18] sm:$0xff]  ;;  %v52_v6 = vld [vmem:[#allocation5 + $0x20] sm:$0xff]  ;;  %s158_s6 = sshll.u32 %s362_s1, 4  ;;  %s159_s6 = int_to_ptr.vmem [resolvable:$true] %s158_s6 }
  0x28   :  { %v237_v5 = vpack.c.bf16 %v51_v4, %v50_v2  ;;  %v53_v7 = vld [vmem:[#allocation5 + $0x28] sm:$0xff]  ;;  %v40_v9 = vld [vmem:[#allocation2] sm:$0xff]  ;;  %v42_v10 = vld [vmem:[#allocation2 + $0x10] sm:$0xff]  ;;  %s330_s7 = scalar_lea.vmem %s159_s6, 512  ;;  %p335_p3 = scmp.lt.s32.totalorder %s159_s6, %s159_s6 }
  0x29   :  { %234 = vmatprep.subr.bf16.mxu0 %v233_v3  ;;  %265 = vmatprep.subr.bf16.mxu1 %v233_v3  ;;  %v241_v8 = vpack.c.bf16 %v53_v7, %v52_v6  ;;  %v54_v11 = vld [vmem:[#allocation5 + $0x30] sm:$0xff]  ;;  %v55_v12 = vld [vmem:[#allocation5 + $0x38] sm:$0xff]  ;;  %v171_v13 = vadd.f32 -128.0, %v40_v9  ;;  %v173_v14 = vadd.f32 -128.0, %v42_v10  ;;  %v56_v16 = vld [vmem:[#allocation5 + $0x40] sm:$0xff]  ;;  %p331_p2 = scmp.ne.s32.totalorder %s159_s6, %s330_s7  ;;  %p336_p4 = scmp.lt.s32.totalorder %s330_s7, %s330_s7 }
  0x2a   :  { %236 = vmatpush3.bf16.msra.mxu0 %v233_v3  ;;  %273 = vmatpush3.bf16.msra.mxu1 %v233_v3  ;;  %v245_v15 = vpack.c.bf16 %v55_v12, %v54_v11  ;;  %v57_v17 = vld [vmem:[#allocation5 + $0x48] sm:$0xff]  ;;  %v58_v19 = vld [vmem:[#allocation5 + $0x50] sm:$0xff]  ;;  %v59_v20 = vld [vmem:[#allocation5 + $0x58] sm:$0xff] }
  0x2b   :  { %238 = vmatprep.subr.bf16.mxu0 %v237_v5  ;;  %266 = vmatprep.subr.bf16.mxu1 %v237_v5  ;;  %v249_v18 = vpack.c.bf16 %v57_v17, %v56_v16  ;;  %v253_v21 = vpack.c.bf16 %v59_v20, %v58_v19  ;;  %v60_v22 = vld [vmem:[#allocation5 + $0x60] sm:$0xff]  ;;  %v61_v23 = vld [vmem:[#allocation5 + $0x68] sm:$0xff]  ;;  %v62_v25 = vld [vmem:[#allocation5 + $0x70] sm:$0xff]  ;;  %p337_p5 = por %p336_p4, %p335_p3 }
  0x2c   :  { %227 = vmatprep.mubr.f32.mxu0 %v171_v13  ;;  %230 = vmatprep.mubr.f32.mxu1 %v173_v14  ;;  %v257_v24 = vpack.c.bf16 %v61_v23, %v60_v22  ;;  %v63_v26 = vld [vmem:[#allocation5 + $0x78] sm:$0xff]  ;;  %v41_v28 = vld [vmem:[#allocation2 + $0x8] sm:$0xff] }
  0x2d   :  { %v261_v27 = vpack.c.bf16 %v63_v26, %v62_v25  ;;  %v43_v29 = vld [vmem:[#allocation2 + $0x18] sm:$0xff]  ;;  %v172_v30 = vadd.f32 -128.0, %v41_v28  ;;  %p338_p6 = pnand %p337_p5, %p331_p2 }
  0x2e   :  { %240 = vmatpush3.bf16.msra.mxu0 %v237_v5  ;;  %274 = vmatpush3.bf16.msra.mxu1 %v237_v5  ;;  %v174_v31 = vadd.f32 -128.0, %v43_v29 }
  0x2f   :  { %242 = vmatprep.subr.bf16.mxu0 %v241_v8  ;;  %267 = vmatprep.subr.bf16.mxu1 %v241_v8 }
  0x32   :  { %244 = vmatpush3.bf16.msra.mxu0 %v241_v8  ;;  %275 = vmatpush3.bf16.msra.mxu1 %v241_v8 }
  0x33   :  { %246 = vmatprep.subr.bf16.mxu0 %v245_v15  ;;  %268 = vmatprep.subr.bf16.mxu1 %v245_v15 }
  0x36   :  { %248 = vmatpush3.bf16.msra.mxu0 %v245_v15  ;;  %276 = vmatpush3.bf16.msra.mxu1 %v245_v15 }
  0x37   :  { %250 = vmatprep.subr.bf16.mxu0 %v249_v18  ;;  %269 = vmatprep.subr.bf16.mxu1 %v249_v18 }
  0x3a   :  { %252 = vmatpush3.bf16.msra.mxu0 %v249_v18  ;;  %277 = vmatpush3.bf16.msra.mxu1 %v249_v18 }
  0x3b   :  { %254 = vmatprep.subr.bf16.mxu0 %v253_v21  ;;  %270 = vmatprep.subr.bf16.mxu1 %v253_v21 }
  0x3e   :  { %256 = vmatpush3.bf16.msra.mxu0 %v253_v21  ;;  %278 = vmatpush3.bf16.msra.mxu1 %v253_v21 }
  0x3f   :  { %258 = vmatprep.subr.bf16.mxu0 %v257_v24  ;;  %271 = vmatprep.subr.bf16.mxu1 %v257_v24 }
  0x42   :  { %260 = vmatpush3.bf16.msra.mxu0 %v257_v24  ;;  %279 = vmatpush3.bf16.msra.mxu1 %v257_v24 }
  0x43   :  { %262 = vmatprep.subr.bf16.mxu0 %v261_v27  ;;  %272 = vmatprep.subr.bf16.mxu1 %v261_v27 }
  0x46   :  { %264 = vmatpush3.bf16.msra.mxu0 %v261_v27  ;;  %280 = vmatpush3.bf16.msra.mxu1 %v261_v27 }
  0x49   :  { %228 = vmatmul.mubr.f32.vlgmr.msra.gmra.mrb[0].mxu0 %v172_v30  ;;  %231 = vmatmul.mubr.f32.vlgmr.msra.gmra.mrb[0].mxu1 %v174_v31 }
 0x11c   :  { %v229_v32 = vpop.f32.mrb[0].mxu0  ;;  %v232_v33 = vpop.f32.mrb[0].mxu1 }
 0x11d   :  { %150 = vst [vmem:[#allocation7 + $0x8] sm:$0xff] %v229_v32  ;;  %152 = vst [vmem:[#allocation7 + $0x18] sm:$0xff] %v232_v33  ;;  %v130_v34 = vpop.f32.mrb[1].mxu0  ;;  %v140_v35 = vpop.f32.mrb[1].mxu1 }
 0x11e   :  { %149 = vst [vmem:[#allocation7] sm:$0xff] %v130_v34  ;;  %151 = vst [vmem:[#allocation7 + $0x10] sm:$0xff] %v140_v35 }
 0x11f   :  { %341 = shalt.err (!%p338_p6)
}
 0x120   :  { %s342_s10 = scalar_lea.hbm %s425_s2, 512 }
 0x121   :  { %p343_p7 = scmp.ne.s32.totalorder %s425_s2, %s342_s10  ;;  %p346_p8 = scmp.lt.u32.totalorder %s342_s10, %s425_s2 }
 0x123   :  { %p348_p9 = pnand %p346_p8, %p343_p7 }
 0x125   :  { %351 = shalt.err (!%p348_p9)
}
 0x126   :  { %164 = dma.vmem_to_hbm [thread:$0]  %s159_s6, 512, %s425_s2, [#allocation4], %s359_s19, %s359_s19, %s360_s20  }
 0x127   :  { %356 = dma.done.wait [#allocation4], 512  }
 0x128   :  { %357 = vsyncadd [#allocation4], 4294966784 }
 0x129   :  { %168 = vsyncpa [#allocation3], 1 }
 0x12a   :  { %169 = vsyncpa [#allocation6], 1 }
 0x12b   :  { %170 = vsyncpa [#allocation4], 1 }

</bundles_post_ra>
